<compile_context>
chip_gen: v6e
topology: v6e:2x2x1
jax: 0.10.0
libtpu: 0.0.40
codegen_flags: <defaults>
</compile_context>

<pallas_src>
import jax
import jax.numpy as jnp
from jax.experimental import pallas as pl
from jax.experimental.pallas import tpu as pltpu


def _round_up(x, m):
    return (x + m - 1) // m * m


def _critic_mlp_kernel(s_ref, a_ref, w1_ref, b1_ref,
                       w2_ref, b2_ref, w3_ref, b3_ref, o_ref):
    """Fused 3-layer MLP on one batch tile."""
    s = s_ref[...]                                   # (bt, S)  f32
    a = a_ref[...]                                   # (bt, A)  f32
    bt = s.shape[0]
    kp = w1_ref.shape[0]                             # padded layer-1 fan-in
    pad = kp - (s.shape[1] + a.shape[1])             # static Python int

    # Layer 1 (f32 inputs, single K=kp MXU pass): x = [s | a | 0-pad]
    parts = [s, a]
    if pad:
        parts.append(jnp.zeros((bt, pad), s.dtype))
    x = jnp.concatenate(parts, axis=1)               # (bt, kp)
    h1 = jnp.dot(x, w1_ref[...], preferred_element_type=jnp.float32)
    h1 = jnp.maximum(h1 + b1_ref[...], 0.0).astype(jnp.bfloat16)     # (bt, H)

    # Layer 2 (bf16 MXU inputs, f32 accumulation)
    h2 = jnp.dot(h1, w2_ref[...], preferred_element_type=jnp.float32)
    h2 = jnp.maximum(h2 + b2_ref[...], 0.0).astype(jnp.bfloat16)     # (bt, H)

    # Layer 3: narrow (bt, A) store. Masked vst on A lanes, but ~64x less HBM
    # writeback than a 128-wide padded slab.
    q = jnp.dot(h2, w3_ref[...], preferred_element_type=jnp.float32)
    o_ref[...] = (q + b3_ref[...]).astype(o_ref.dtype)               # (bt, A)


def init_critic_params(key, state_dim, action_dim, hidden_size):
    """PyTorch-style uniform(-1/sqrt(fan_in), +1/sqrt(fan_in)) init, f32."""
    d_in = state_dim + action_dim
    dims = [(d_in, hidden_size), (hidden_size, hidden_size),
            (hidden_size, action_dim)]
    params = []
    for fan_in, fan_out in dims:
        key, kw, kb = jax.random.split(key, 3)
        bound = 1.0 / (fan_in ** 0.5)
        w = jax.random.uniform(kw, (fan_in, fan_out), jnp.float32, -bound, bound)
        b = jax.random.uniform(kb, (1, fan_out), jnp.float32, -bound, bound)
        params += [w, b]
    return tuple(params)


def prepare_kernel_params(params, state_dim, action_dim):
    """One-time weight prep (outside the hot path):
    zero-row-pad W1 to a sublane-aligned (Kp, H) f32 matrix (folds the concat
    into one MXU pass), cast layer-2/3 weights to bf16, keep biases in f32."""
    w1, b1, w2, b2, w3, b3 = params
    H = w1.shape[1]
    d_in = state_dim + action_dim
    kp = _round_up(d_in, 8)
    w1p = jnp.zeros((kp, H), jnp.float32).at[:d_in, :].set(w1)
    return (w1p, b1.astype(jnp.float32),
            w2.astype(jnp.bfloat16), b2.astype(jnp.float32),
            w3.astype(jnp.bfloat16), b3.astype(jnp.float32))


def critic_forward(state, action, kernel_params, action_dim, *, block_b=2048):
    """JAX wrapper mirroring Critic.forward(state, action)."""
    w1p, b1, w2, b2, w3, b3 = kernel_params
    action = action.reshape(-1, action_dim)          # action.view(-1, A)

    B, S = state.shape
    A = action_dim
    H = w2.shape[0]
    Kp = w1p.shape[0]

    # Split B into ~equal tiles of <= block_b rows (multiple of 8). Use at
    # least 2 tiles when possible so v7x's two TensorCores both get work, and
    # so ragged batches (e.g. 1030) don't pad up to a whole extra tile.
    n_tiles = max(2, pl.cdiv(B, block_b))
    bt = _round_up(pl.cdiv(B, n_tiles), 8)
    B_pad = _round_up(B, bt)
    if B_pad != B:
        state = jnp.pad(state, ((0, B_pad - B), (0, 0)))
        action = jnp.pad(action, ((0, B_pad - B), (0, 0)))

    row = lambda shp: pl.BlockSpec(shp, lambda i: (i, 0))   # batch-tiled stream
    rep = lambda shp: pl.BlockSpec(shp, lambda i: (0, 0))   # VMEM-resident weights

    q_pad = pl.pallas_call(
        _critic_mlp_kernel,
        out_shape=jax.ShapeDtypeStruct((B_pad, A), jnp.float32),
        grid=(B_pad // bt,),
        in_specs=[
            row((bt, S)), row((bt, A)),
            rep((Kp, H)), rep((1, H)),
            rep((H, H)), rep((1, H)),
            rep((H, A)), rep((1, A)),
        ],
        out_specs=row((bt, A)),
        compiler_params=pltpu.CompilerParams(
            dimension_semantics=("parallel",)),              # megacore on v7x
    )(state, action, w1p, b1, w2, b2, w3, b3)

    return q_pad[:B]


def _critic_ref_f32(state, action, params, action_dim):
    """Pure-JAX f32 reference (PyTorch semantics)."""
    w1, b1, w2, b2, w3, b3 = params
    x = jnp.concatenate([state, action.reshape(-1, action_dim)], axis=1)
    h = jnp.maximum(x @ w1 + b1, 0.0)
    h = jnp.maximum(h @ w2 + b2, 0.0)
    return h @ w3 + b3


def _critic_ref_mixed(state, action, params, action_dim):
    """Reference matching the kernel arithmetic: f32 layer 1, bf16-input
    layers 2/3 with f32 accumulation."""
    w1, b1, w2, b2, w3, b3 = params
    x = jnp.concatenate([state, action.reshape(-1, action_dim)], axis=1)
    h = jnp.maximum(jnp.dot(x, w1, preferred_element_type=jnp.float32) + b1, 0.0)
    h = jnp.dot(h.astype(jnp.bfloat16), w2.astype(jnp.bfloat16),
                preferred_element_type=jnp.float32)
    h = jnp.maximum(h + b2, 0.0)
    q = jnp.dot(h.astype(jnp.bfloat16), w3.astype(jnp.bfloat16),
                preferred_element_type=jnp.float32)
    return q + b3


if __name__ == "__main__":
    state_dim, action_dim, hidden_size = 4, 2, 128
    batch = 8

    key = jax.random.PRNGKey(0)
    k_params, k_state, k_action = jax.random.split(key, 3)

    params = init_critic_params(k_params, state_dim, action_dim, hidden_size)
    kparams = prepare_kernel_params(params, state_dim, action_dim)

    state = jax.random.normal(k_state, (batch, state_dim), jnp.float32)
    action = jax.random.normal(k_action, (batch, action_dim), jnp.float32)

    q = critic_forward(state, action, kparams, action_dim)
    q = jax.block_until_ready(q)
    assert q.shape == (batch, action_dim)

    q_ref_mixed = _critic_ref_mixed(state, action, params, action_dim)
    q_ref_f32 = _critic_ref_f32(state, action, params, action_dim)
    assert jnp.allclose(q, q_ref_mixed, atol=1e-2, rtol=1e-2), "mismatch vs mixed-precision reference"
    assert jnp.allclose(q, q_ref_f32, atol=5e-2, rtol=5e-2), "mismatch vs f32 reference"

    # Ragged large batch: B=1030 now splits into 2 x 520-row tiles (no full
    # extra tile of padding) and exercises the multi-step / megacore grid path.
    big_b = 1030
    kb1, kb2 = jax.random.split(jax.random.PRNGKey(1))
    big_state = jax.random.normal(kb1, (big_b, state_dim), jnp.float32)
    big_action = jax.random.normal(kb2, (big_b, action_dim), jnp.float32)
    q_big = jax.block_until_ready(
        critic_forward(big_state, big_action, kparams, action_dim))
    q_big_ref = _critic_ref_mixed(big_state, big_action, params, action_dim)
    assert q_big.shape == (big_b, action_dim)
    assert jnp.allclose(q_big, q_big_ref, atol=1e-2, rtol=1e-2), "mismatch on large batch"

    print("KERNEL_OK")
</pallas_src>

<mosaic_0001>
module attributes {stable_mosaic.version = 11 : i64} {
  func.func @_critic_mlp_kernel(%arg0: i32, %arg1: memref<8x4xf32, #tpu.memory_space<vmem>>, %arg2: memref<8x2xf32, #tpu.memory_space<vmem>>, %arg3: memref<8x128xf32, #tpu.memory_space<vmem>>, %arg4: memref<1x128xf32, #tpu.memory_space<vmem>>, %arg5: memref<128x128xbf16, #tpu.memory_space<vmem>>, %arg6: memref<1x128xf32, #tpu.memory_space<vmem>>, %arg7: memref<128x2xbf16, #tpu.memory_space<vmem>>, %arg8: memref<1x2xf32, #tpu.memory_space<vmem>>, %arg9: memref<8x2xf32, #tpu.memory_space<vmem>>) attributes {dimension_semantics = [#tpu.dimension_semantics<parallel>], iteration_bounds = array<i64: 1>, scalar_prefetch = 0 : i64, scratch_operands = 0 : i64, tpu.core_type = #tpu.core_type<tc>, window_params = [{transform_indices = @transform_0, window_bounds = array<i64: 8, 4>}, {transform_indices = @transform_1, window_bounds = array<i64: 8, 2>}, {pipeline_mode = #tpu.pipeline_mode<synchronous>, transform_indices = @transform_2, window_bounds = array<i64: 8, 128>}, {pipeline_mode = #tpu.pipeline_mode<synchronous>, transform_indices = @transform_3, window_bounds = array<i64: 1, 128>}, {pipeline_mode = #tpu.pipeline_mode<synchronous>, transform_indices = @transform_4, window_bounds = array<i64: 128, 128>}, {pipeline_mode = #tpu.pipeline_mode<synchronous>, transform_indices = @transform_5, window_bounds = array<i64: 1, 128>}, {pipeline_mode = #tpu.pipeline_mode<synchronous>, transform_indices = @transform_6, window_bounds = array<i64: 128, 2>}, {pipeline_mode = #tpu.pipeline_mode<synchronous>, transform_indices = @transform_7, window_bounds = array<i64: 1, 2>}, {transform_indices = @transform_8, window_bounds = array<i64: 8, 2>}]} {
    %c0 = arith.constant 0 : index
    %c0_0 = arith.constant 0 : index
    %0 = vector.load %arg1[%c0, %c0_0] : memref<8x4xf32, #tpu.memory_space<vmem>>, vector<8x4xf32>
    %c0_1 = arith.constant 0 : index
    %c0_2 = arith.constant 0 : index
    %1 = vector.load %arg2[%c0_1, %c0_2] : memref<8x2xf32, #tpu.memory_space<vmem>>, vector<8x2xf32>
    %cst = arith.constant 0.000000e+00 : f32
    %2 = vector.broadcast %cst : f32 to vector<8x2xf32>
    %3 = tpu.concatenate %0, %1, %2 in 1 : vector<8x4xf32>, vector<8x2xf32>, vector<8x2xf32> -> vector<8x8xf32>
    %c0_3 = arith.constant 0 : index
    %c0_4 = arith.constant 0 : index
    %4 = vector.load %arg3[%c0_3, %c0_4] : memref<8x128xf32, #tpu.memory_space<vmem>>, vector<8x128xf32>
    %cst_5 = arith.constant dense<0.000000e+00> : vector<8x128xf32>
    %5 = tpu.matmul %3, %4, %cst_5 {dimension_numbers = #tpu.dot_dimension_numbers<[1], [0], [0], [1], [0, 0, 1, 1], [], []>} : vector<8x8xf32>, vector<8x128xf32>, vector<8x128xf32> -> vector<8x128xf32>
    %c0_6 = arith.constant 0 : index
    %c0_7 = arith.constant 0 : index
    %6 = vector.load %arg4[%c0_6, %c0_7] : memref<1x128xf32, #tpu.memory_space<vmem>>, vector<1x128xf32>
    %7 = vector.broadcast %6 : vector<1x128xf32> to vector<8x128xf32>
    %8 = arith.addf %5, %7 : vector<8x128xf32>
    %cst_8 = arith.constant 0.000000e+00 : f32
    %9 = vector.broadcast %cst_8 : f32 to vector<8x128xf32>
    %10 = arith.maximumf %8, %9 : vector<8x128xf32>
    %11 = arith.truncf %10 : vector<8x128xf32> to vector<8x128xbf16>
    %c0_9 = arith.constant 0 : index
    %c0_10 = arith.constant 0 : index
    %12 = vector.load %arg5[%c0_9, %c0_10] : memref<128x128xbf16, #tpu.memory_space<vmem>>, vector<128x128xbf16>
    %cst_11 = arith.constant dense<0.000000e+00> : vector<8x128xf32>
    %13 = tpu.matmul %11, %12, %cst_11 {dimension_numbers = #tpu.dot_dimension_numbers<[1], [0], [0], [1], [0, 0, 1, 1], [], []>} : vector<8x128xbf16>, vector<128x128xbf16>, vector<8x128xf32> -> vector<8x128xf32>
    %c0_12 = arith.constant 0 : index
    %c0_13 = arith.constant 0 : index
    %14 = vector.load %arg6[%c0_12, %c0_13] : memref<1x128xf32, #tpu.memory_space<vmem>>, vector<1x128xf32>
    %15 = vector.broadcast %14 : vector<1x128xf32> to vector<8x128xf32>
    %16 = arith.addf %13, %15 : vector<8x128xf32>
    %cst_14 = arith.constant 0.000000e+00 : f32
    %17 = vector.broadcast %cst_14 : f32 to vector<8x128xf32>
    %18 = arith.maximumf %16, %17 : vector<8x128xf32>
    %19 = arith.truncf %18 : vector<8x128xf32> to vector<8x128xbf16>
    %c0_15 = arith.constant 0 : index
    %c0_16 = arith.constant 0 : index
    %20 = vector.load %arg7[%c0_15, %c0_16] : memref<128x2xbf16, #tpu.memory_space<vmem>>, vector<128x2xbf16>
    %cst_17 = arith.constant dense<0.000000e+00> : vector<8x2xf32>
    %21 = tpu.matmul %19, %20, %cst_17 {dimension_numbers = #tpu.dot_dimension_numbers<[1], [0], [0], [1], [0, 0, 1, 1], [], []>} : vector<8x128xbf16>, vector<128x2xbf16>, vector<8x2xf32> -> vector<8x2xf32>
    %c0_18 = arith.constant 0 : index
    %c0_19 = arith.constant 0 : index
    %22 = vector.load %arg8[%c0_18, %c0_19] : memref<1x2xf32, #tpu.memory_space<vmem>>, vector<1x2xf32>
    %23 = vector.broadcast %22 : vector<1x2xf32> to vector<8x2xf32>
    %24 = arith.addf %21, %23 : vector<8x2xf32>
    %c0_20 = arith.constant 0 : index
    %c0_21 = arith.constant 0 : index
    %25 = vector.load %arg9[%c0_20, %c0_21] : memref<8x2xf32, #tpu.memory_space<vmem>>, vector<8x2xf32>
    tpu.vector_store %arg9[%c0_20, %c0_21], %24 {strides = array<i32>} : memref<8x2xf32, #tpu.memory_space<vmem>>, vector<8x2xf32>,
    return
  }
  func.func @transform_0(%arg0: i32) -> (i32, i32) {
    %c0_i32 = arith.constant 0 : i32
    %c0_i32_0 = arith.constant 0 : i32
    return %arg0, %c0_i32 : i32, i32
  }
  func.func @transform_1(%arg0: i32) -> (i32, i32) {
    %c0_i32 = arith.constant 0 : i32
    %c0_i32_0 = arith.constant 0 : i32
    return %arg0, %c0_i32 : i32, i32
  }
  func.func @transform_2(%arg0: i32) -> (i32, i32) {
    %c0_i32 = arith.constant 0 : i32
    %c0_i32_0 = arith.constant 0 : i32
    %c0_i32_1 = arith.constant 0 : i32
    return %c0_i32, %c0_i32_0 : i32, i32
  }
  func.func @transform_3(%arg0: i32) -> (i32, i32) {
    %c0_i32 = arith.constant 0 : i32
    %c0_i32_0 = arith.constant 0 : i32
    %c0_i32_1 = arith.constant 0 : i32
    return %c0_i32, %c0_i32_0 : i32, i32
  }
  func.func @transform_4(%arg0: i32) -> (i32, i32) {
    %c0_i32 = arith.constant 0 : i32
    %c0_i32_0 = arith.constant 0 : i32
    %c0_i32_1 = arith.constant 0 : i32
    return %c0_i32, %c0_i32_0 : i32, i32
  }
  func.func @transform_5(%arg0: i32) -> (i32, i32) {
    %c0_i32 = arith.constant 0 : i32
    %c0_i32_0 = arith.constant 0 : i32
    %c0_i32_1 = arith.constant 0 : i32
    return %c0_i32, %c0_i32_0 : i32, i32
  }
  func.func @transform_6(%arg0: i32) -> (i32, i32) {
    %c0_i32 = arith.constant 0 : i32
    %c0_i32_0 = arith.constant 0 : i32
    %c0_i32_1 = arith.constant 0 : i32
    return %c0_i32, %c0_i32_0 : i32, i32
  }
  func.func @transform_7(%arg0: i32) -> (i32, i32) {
    %c0_i32 = arith.constant 0 : i32
    %c0_i32_0 = arith.constant 0 : i32
    %c0_i32_1 = arith.constant 0 : i32
    return %c0_i32, %c0_i32_0 : i32, i32
  }
  func.func @transform_8(%arg0: i32) -> (i32, i32) {
    %c0_i32 = arith.constant 0 : i32
    %c0_i32_0 = arith.constant 0 : i32
    return %arg0, %c0_i32 : i32, i32
  }
}

</mosaic_0001>

<bundles_post_ra>
// kernel: tpu_custom_call.1
= control target key start
LH: loop header
LB: loop body
LE: loop exit
PB: predicated region body
PF: predicated region fallthrough
CT: control target
= control target key end

     0   :  { %v458_v1 = vmov 0.0   ;;  %vm459_vm0 = vmmov 0   ;;  %s460_s9 = smov 4   ;;  %vm36_vm1 = vcmask 31744   ;;  %vm38_vm2 = vcmask 48128   ;;  %s598_s1 = inlined_call_operand.vmem [shape: f32[8,2], index: 1, kind: input, shape index: {}]   ;;  %s599_s2 = inlined_call_operand.vmem [shape: f32[8,128], index: 2, kind: input, shape index: {}]   ;;  %s600_s4 = inlined_call_operand.vmem [shape: bf16[128,128], index: 4, kind: input, shape index: {}]   ;;  %s601_s0 = inlined_call_operand.vmem [shape: f32[8,4], index: 0, kind: input, shape index: {}]   ;;  %s602_s6 = inlined_call_operand.vmem [shape: bf16[128,2], index: 6, kind: input, shape index: {}]   ;;  %s603_s3 = inlined_call_operand.vmem [shape: f32[1,128], index: 3, kind: input, shape index: {}]   ;;  %s604_s5 = inlined_call_operand.vmem [shape: f32[1,128], index: 5, kind: input, shape index: {}]   ;;  %s605_s7 = inlined_call_operand.vmem [shape: f32[1,2], index: 7, kind: input, shape index: {}]   ;;  %s606_s8 = inlined_call_operand.vmem [shape: f32[8,2], index: 8, kind: output, shape index: {}]  }
   0x1   :  { %v31_v0 = vld [vmem:[%s598_s1] sm:$0xff]  ;;  %394 = vmatprep.subr.mxu0 %v458_v1  ;;  %396 = vmatprep.mubr.msk.f32.mxu0 %vm459_vm0, %v458_v1  ;;  %v442_v3 = vld [vmem:[%s600_s4 + $0x38] sm:$0xff]   ;;  %v443_v4 = vld [vmem:[%s600_s4 + $0x30] sm:$0xff]   ;;  %vm48_vm3 = vcmask 64512   ;;  %vm348_vm4 = vcmask 15360  }
   0x2   :  { %v40_v2 = vld [vmem:[%s599_s2] sm:$0xff]  ;;  %33 = vrot.lane.b32.xlu0 %v31_v0, %s460_s9  ;;  %399 = vmatprep.subr.bf16.mxu1 %v458_v1  ;;  %v444_v5 = vld [vmem:[%s600_s4 + $0x28] sm:$0xff]   ;;  %v446_v7 = vld [vmem:[%s600_s4 + $0x18] sm:$0xff]  }
   0x3   :  { %395 = vmatpush3.msra.mxu0 %v40_v2  ;;  %415 = vmatprep.mubr.msk.bf16.mxu1 %vm459_vm0, %v458_v1  ;;  %v445_v6 = vld [vmem:[%s600_s4 + $0x20] sm:$0xff]   ;;  %v447_v8 = vld [vmem:[%s600_s4 + $0x10] sm:$0xff]   ;;  %v448_v13 = vld [vmem:[%s600_s4 + $0x8] sm:$0xff]  }
   0x4   :  { %400 = vmatpush3.bf16.msra.mxu1 %v442_v3  ;;  %419 = vmatprep.subr.bf16.mxu0 %v458_v1  ;;  %v30_v9 = vld [vmem:[%s601_s0] sm:$0xff]  ;;  %v450_v15 = vld [vmem:[%s602_s6 + $0x38] sm:$0xff]   ;;  %v451_v16 = vld [vmem:[%s602_s6 + $0x30] sm:$0xff]  }
   0x5   :  { %401 = vmatprep.subr.bf16.mxu1 %v458_v1  ;;  %v449_v14 = vld [vmem:[%s600_s4] sm:$0xff]   ;;  %v452_v17 = vld [vmem:[%s602_s6 + $0x28] sm:$0xff]   ;;  %v454_v19 = vld [vmem:[%s602_s6 + $0x18] sm:$0xff]  }
   0x6   :  { %v453_v18 = vld [vmem:[%s602_s6 + $0x20] sm:$0xff]   ;;  %v455_v20 = vld [vmem:[%s602_s6 + $0x10] sm:$0xff]   ;;  %v456_v27 = vld [vmem:[%s602_s6 + $0x8] sm:$0xff]  }
   0x7   :  { %v354_v21 = vld [vmem:[%s603_s3] ss:$0 sm:$0xff] }
   0x8   :  { %402 = vmatpush3.bf16.msra.mxu1 %v443_v4  ;;  %v457_v28 = vld [vmem:[%s602_s6] sm:$0xff]  }
   0x9   :  { %403 = vmatprep.subr.bf16.mxu1 %v458_v1  ;;  %v356_v29 = vld [vmem:[%s604_s5] ss:$0 sm:$0xff] }
   0xa   :  { %v365_v37 = vld [vmem:[%s605_s7] ss:$0 sm:$0xff] }
   0xc   :  { %404 = vmatpush3.bf16.msra.mxu1 %v444_v5 }
   0xd   :  { %405 = vmatprep.subr.bf16.mxu1 %v458_v1 }
  0x10   :  { %406 = vmatpush3.bf16.msra.mxu1 %v445_v6 }
  0x11   :  { %407 = vmatprep.subr.bf16.mxu1 %v458_v1 }
  0x14   :  { %408 = vmatpush3.bf16.msra.mxu1 %v446_v7 }
  0x15   :  { %409 = vmatprep.subr.bf16.mxu1 %v458_v1 }
  0x18   :  { %410 = vmatpush3.bf16.msra.mxu1 %v447_v8 }
  0x19   :  { %411 = vmatprep.subr.bf16.mxu1 %v458_v1 }
  0x1c   :  { %412 = vmatpush3.bf16.msra.mxu1 %v448_v13 }
  0x1d   :  { %413 = vmatprep.subr.bf16.mxu1 %v458_v1 }
  0x20   :  { %414 = vmatpush3.bf16.msra.mxu1 %v449_v14 }
  0x74   :  { %v34_v10 = vpop.permute.xlu0 %33 }
  0x75   :  { %v37_v11 = vsel %vm36_vm1, %v30_v9, %v34_v10 }
  0x76   :  { %v39_v12 = vsel %vm38_vm2, %v37_v11, 0.0 }
  0x77   :  { %397 = vmatmul.mubr.msk.f32.vlgmr.msra.gmra.mxu0 %vm48_vm3, %v39_v12 }
  0x78   :  { %435 = vmatprep.mubr.msk.bf16.mxu0 %vm459_vm0, %v458_v1  ;;  %420 = vmatpush3.bf16.msra.mxu0 %v450_v15 }
  0x79   :  { %421 = vmatprep.subr.bf16.mxu0 %v458_v1 }
  0x7c   :  { %422 = vmatpush3.bf16.msra.mxu0 %v451_v16 }
  0x7d   :  { %423 = vmatprep.subr.bf16.mxu0 %v458_v1 }
  0x80   :  { %424 = vmatpush3.bf16.msra.mxu0 %v452_v17 }
  0x81   :  { %425 = vmatprep.subr.bf16.mxu0 %v458_v1 }
  0x84   :  { %426 = vmatpush3.bf16.msra.mxu0 %v453_v18 }
  0x85   :  { %427 = vmatprep.subr.bf16.mxu0 %v458_v1 }
  0x88   :  { %428 = vmatpush3.bf16.msra.mxu0 %v454_v19 }
  0x89   :  { %429 = vmatprep.subr.bf16.mxu0 %v458_v1 }
  0x8c   :  { %430 = vmatpush3.bf16.msra.mxu0 %v455_v20 }
  0x8d   :  { %431 = vmatprep.subr.bf16.mxu0 %v458_v1 }
  0x90   :  { %432 = vmatpush3.bf16.msra.mxu0 %v456_v27 }
  0x91   :  { %433 = vmatprep.subr.bf16.mxu0 %v458_v1 }
  0x94   :  { %434 = vmatpush3.bf16.msra.mxu0 %v457_v28 }
 0x137   :  { %v118_v22 = vpop.f32.mrf.mxu0 }
 0x138   :  { %v119_v23 = vadd.f32 %v354_v21, %v118_v22 }
 0x139   :  { %v398_v24 = vpop.f32.mrf.mxu0 }
 0x13a   :  { %v122_v25 = vmax.f32 %v119_v23, 0.0 }
 0x13c   :  { %v123_v26 = vpack.c.bf16 %v122_v25, %v122_v25 }
 0x13e   :  { %416 = vmatmul.mubr.bf16.vlgmr.msra.gmra.mxu1 %v123_v26 }
 0x1fe   :  { %v229_v30 = vpop.f32.mrf.mxu1 }
 0x1ff   :  { %v230_v31 = vadd.f32 %v356_v29, %v229_v30 }
 0x200   :  { %v417_v32 = vpop.f32.mrf.mxu1 }
 0x201   :  { %v235_v33 = vmax.f32 %v230_v31, 0.0 }
 0x202   :  { %v232_v34 = vpop.f32.mrf.mxu1 }
 0x203   :  { %v236_v35 = vpack.c.bf16 %v235_v33, %v235_v33 }
 0x204   :  { %v418_v36 = vpop.f32.mrf.mxu1 }
 0x205   :  { %436 = vmatmul.mubr.bf16.vlgmr.msra.gmra.mxu0 %v236_v35 }
 0x2c5   :  { %v342_v38 = vpop.f32.mrf.mxu0 }
 0x2c6   :  { %v343_v39 = vadd.f32 %v365_v37, %v342_v38 }
 0x2c7   :  { %v437_v40 = vpop.f32.mrf.mxu0 }
 0x2c8   :  { %349 = vst.msk [vmem:[%s606_s8] sm:$0xff] %vm348_vm4, %v343_v39 }
 0x2c9   :  { %v345_v41 = vpop.f32.mrf.mxu0 }
 0x2cb   :  { %v438_v42 = vpop.f32.mrf.mxu0 }

</bundles_post_ra>
